<compile_context>
chip_gen: v6e
topology: v6e:2x2x1
jax: 0.10.0
libtpu: 0.0.40
codegen_flags: <defaults>
</compile_context>

<pallas_src>
import functools

import jax
import jax.numpy as jnp
from jax.experimental import pallas as pl
from jax.experimental.pallas import tpu as pltpu


def _round_up(a, b):
    return -(-a // b) * b


def _vmem_capacity_bytes():
    """Per-TensorCore VMEM capacity; conservative fallback if the query fails."""
    try:
        info = pltpu.get_tpu_info()
        cap = int(getattr(info, "vmem_capacity_bytes", 0) or 0)
        if cap > 0:
            return cap
    except Exception:
        pass
    return 64 * 2**20  # v7x per-TC size (smallest current generation)


def _dcc_kernel(xa_ref, xh_ref, w_ref, o_ref, *, dilation, compute_dtype):
    # xa_ref: (B, C, T)   x columns [ j*T, (j+1)*T )            (ragged-clipped)
    # xh_ref: (B, C, Hw)  x columns [ (j+1)*T, (j+1)*T + Hw )   (clamped halo)
    # w_ref : (2, C, C)   w_ref[k] = weight[:, :, k]  (C_out, C_in)
    # o_ref : (B, C, T)   y columns [ j*T, (j+1)*T )
    t = o_ref.shape[-1]
    w0 = w_ref[0]
    w1 = w_ref[1]
    for b in range(o_ref.shape[0]):          # small static batch sub-block (<= 8)
        x0 = xa_ref[b]                       # taps at time t
        xh = xh_ref[b]
        if compute_dtype is not None:        # in-kernel cast (no extra HBM pass)
            x0 = x0.astype(compute_dtype)
            xh = xh.astype(compute_dtype)
        if dilation == t:                    # static Python branch
            x1 = xh
        else:
            # taps at time t + d: tail of the resident tile + head of the halo.
            x1 = jnp.concatenate([x0[:, dilation:], xh[:, :dilation]], axis=-1)
        acc = jnp.dot(w0, x0, preferred_element_type=jnp.float32)
        acc = acc + jnp.dot(w1, x1, preferred_element_type=jnp.float32)
        o_ref[b] = acc.astype(o_ref.dtype)


def dilated_causal_conv1d(x_ncl, weight, dilation, *,
                          compute_dtype=None, tile_l_pref=None,
                          max_batch_block=8):
    """x_ncl: (N, C, L); weight: (C_out=C, C_in=C, 2); returns (N, C, L - dilation)."""
    n, c, l = x_ncl.shape
    assert weight.shape == (c, c, 2)
    assert dilation >= 1
    l_out = l - dilation
    assert l_out > 0, "sequence too short for this dilation"

    out_dtype = x_ncl.dtype
    x_item = jnp.dtype(x_ncl.dtype).itemsize
    o_item = jnp.dtype(out_dtype).itemsize
    cdt = jnp.dtype(compute_dtype) if compute_dtype is not None else jnp.dtype(x_ncl.dtype)
    c_item = cdt.itemsize

    # ---- generation-aware VMEM budget --------------------------------------
    vmem_cap = _vmem_capacity_bytes()
    budget = min(int(0.45 * vmem_cap), 56 * 2**20)         # tile-data budget
    vmem_limit = int(min(0.75 * vmem_cap, 100 * 2**20))    # scoped-VMEM cap

    # ---- tile-size selection -------------------------------------------------
    # Halo block only needs the first `dilation` columns of tile j+1.
    halo_w = _round_up(dilation, 128)
    # Per-column bytes at b_tile=1: double-buffered xa + out blocks, plus the
    # in-kernel intermediates (x1 assembly, cast copy, f32 accumulator).
    den = c * (2 * x_item + 2 * o_item + 2 * c_item + 4)
    fixed = 2 * c * halo_w * x_item + 4 * c * c * c_item
    t_budget = max(128, ((budget - fixed) // max(den, 1)) // 128 * 128)
    t_pref = tile_l_pref if tile_l_pref is not None else 8192
    t_target = max(128, min(t_pref, _round_up(l_out, 128), t_budget))
    # tile_l must be a multiple of halo_w (exact halo block index) and >= dilation
    # (so the t+d tap touches at most one neighbouring block).
    tile_l = max(halo_w, (t_target // halo_w) * halo_w)
    # TODO(synk): dilations so large that a single halo block exceeds the VMEM
    # budget would need a multi-block decomposition of the second tap.

    n_tiles = -(-l_out // tile_l)
    ratio = tile_l // halo_w
    max_halo_blk = (l - 1) // halo_w        # last in-bounds halo block of x

    # ---- batch sub-blocking: amortize per-grid-step overhead for small C ----
    def _step_vmem(bt):
        io = 2 * bt * c * ((tile_l + halo_w) * x_item + tile_l * o_item)
        scratch = bt * c * tile_l * (2 * c_item + 4)
        return io + scratch + 4 * c * c * c_item

    target_io = 2 * 2**20                   # aim to move >= ~2 MiB per grid step
    b_tile = 1
    while (b_tile < min(n, max_batch_block)
           and _step_vmem(b_tile + 1) <= budget
           and b_tile * c * ((tile_l + halo_w) * x_item + tile_l * o_item)
               < target_io):
        b_tile += 1
    n_bblk = -(-n // b_tile)

    # ---- operand prep (weights only; x stays untouched in HBM) --------------
    w_packed = jnp.moveaxis(weight, 2, 0).astype(cdt)        # (2, C_out, C_in)

    kernel = functools.partial(
        _dcc_kernel, dilation=dilation,
        compute_dtype=(cdt if compute_dtype is not None else None))

    halo_map = lambda b, j: (b, 0, jnp.minimum((j + 1) * ratio, max_halo_blk))

    return pl.pallas_call(
        kernel,
        out_shape=jax.ShapeDtypeStruct((n, c, l_out), out_dtype),
        grid=(n_bblk, n_tiles),
        in_specs=[
            pl.BlockSpec((b_tile, c, tile_l), lambda b, j: (b, 0, j)),   # tile j
            pl.BlockSpec((b_tile, c, halo_w), halo_map),                 # narrow halo
            pl.BlockSpec((2, c, c), lambda b, j: (0, 0, 0)),             # packed weights
        ],
        out_specs=pl.BlockSpec((b_tile, c, tile_l), lambda b, j: (b, 0, j)),
        compiler_params=pltpu.CompilerParams(
            dimension_semantics=("parallel", "parallel"),
            vmem_limit_bytes=vmem_limit),
    )(x_ncl, x_ncl, w_packed)


def _reference(x, weight, dilation):
    l_out = x.shape[-1] - dilation
    return (jnp.einsum("oi,nit->not", weight[:, :, 0], x[:, :, :l_out])
            + jnp.einsum("oi,nit->not", weight[:, :, 1],
                         x[:, :, dilation:dilation + l_out]))


if __name__ == "__main__":
    key = jax.random.PRNGKey(0)
    k_x, k_w, k_x2, k_w2, k_x3, k_w3 = jax.random.split(key, 6)

    # --- small test matching the module spec (f32, tight tolerance) ---
    N, C, L, DIL = 2, 4, 16, 2
    x = jax.random.normal(k_x, (N, C, L), dtype=jnp.float32)
    weight = jax.random.normal(k_w, (C, C, 2), dtype=jnp.float32) * 0.1

    y = jax.block_until_ready(dilated_causal_conv1d(x, weight, DIL))
    y_ref = _reference(x, weight, DIL)
    assert y.shape == (N, C, L - DIL)
    assert jnp.allclose(y, y_ref, atol=1e-4, rtol=1e-4)

    # --- bf16 MXU compute path (cast happens in-kernel; f32 accumulation) ---
    y_bf16 = jax.block_until_ready(
        dilated_causal_conv1d(x, weight, DIL, compute_dtype=jnp.bfloat16))
    assert y_bf16.shape == (N, C, L - DIL)
    assert jnp.allclose(y_bf16, y_ref, atol=5e-2, rtol=5e-2)

    # --- multi-tile test: halo across tiles, ragged tail, ragged batch block ---
    N2, C2, L2, DIL2 = 3, 8, 300, 5
    x2 = jax.random.normal(k_x2, (N2, C2, L2), dtype=jnp.float32)
    w2 = jax.random.normal(k_w2, (C2, C2, 2), dtype=jnp.float32) * 0.1
    y2 = jax.block_until_ready(
        dilated_causal_conv1d(x2, w2, DIL2, tile_l_pref=128, max_batch_block=2))
    y2_ref = _reference(x2, w2, DIL2)
    assert y2.shape == (N2, C2, L2 - DIL2)
    assert jnp.allclose(y2, y2_ref, atol=1e-4, rtol=1e-4)

    # --- dilation == tile_l branch (x1 comes entirely from the halo block) ---
    N3, C3, L3, DIL3 = 2, 8, 400, 128
    x3 = jax.random.normal(k_x3, (N3, C3, L3), dtype=jnp.float32)
    w3 = jax.random.normal(k_w3, (C3, C3, 2), dtype=jnp.float32) * 0.1
    y3 = jax.block_until_ready(
        dilated_causal_conv1d(x3, w3, DIL3, tile_l_pref=128))
    y3_ref = _reference(x3, w3, DIL3)
    assert y3.shape == (N3, C3, L3 - DIL3)
    assert jnp.allclose(y3, y3_ref, atol=1e-4, rtol=1e-4)

    print("KERNEL_OK")
</pallas_src>

<mosaic_0001>
module attributes {stable_mosaic.version = 11 : i64} {
  func.func @_dcc_kernel(%arg0: i32, %arg1: i32, %arg2: memref<2x4x128xf32, #tpu.memory_space<vmem>>, %arg3: memref<2x4x128xf32, #tpu.memory_space<vmem>>, %arg4: memref<2x4x4xf32, #tpu.memory_space<vmem>>, %arg5: memref<2x4x128xf32, #tpu.memory_space<vmem>>) attributes {dimension_semantics = [#tpu.dimension_semantics<parallel>, #tpu.dimension_semantics<parallel>], iteration_bounds = array<i64: 1, 1>, scalar_prefetch = 0 : i64, scratch_operands = 0 : i64, tpu.core_type = #tpu.core_type<tc>, window_params = [{transform_indices = @transform_0, window_bounds = array<i64: 2, 4, 128>}, {transform_indices = @transform_1, window_bounds = array<i64: 2, 4, 128>}, {pipeline_mode = #tpu.pipeline_mode<synchronous>, transform_indices = @transform_2, window_bounds = array<i64: 2, 4, 4>}, {transform_indices = @transform_3, window_bounds = array<i64: 2, 4, 128>}]} {
    %c0 = arith.constant 0 : index
    %c0_0 = arith.constant 0 : index
    %c0_1 = arith.constant 0 : index
    %0 = vector.load %arg4[%c0, %c0_0, %c0_1] : memref<2x4x4xf32, #tpu.memory_space<vmem>>, vector<1x4x4xf32>
    %1 = vector.shape_cast %0 : vector<1x4x4xf32> to vector<4x4xf32>
    %c1 = arith.constant 1 : index
    %c0_2 = arith.constant 0 : index
    %c0_3 = arith.constant 0 : index
    %2 = vector.load %arg4[%c1, %c0_2, %c0_3] : memref<2x4x4xf32, #tpu.memory_space<vmem>>, vector<1x4x4xf32>
    %3 = vector.shape_cast %2 : vector<1x4x4xf32> to vector<4x4xf32>
    %c0_4 = arith.constant 0 : index
    %c0_5 = arith.constant 0 : index
    %c0_6 = arith.constant 0 : index
    %4 = vector.load %arg2[%c0_4, %c0_5, %c0_6] : memref<2x4x128xf32, #tpu.memory_space<vmem>>, vector<1x4x128xf32>
    %5 = vector.shape_cast %4 : vector<1x4x128xf32> to vector<4x128xf32>
    %c0_7 = arith.constant 0 : index
    %c0_8 = arith.constant 0 : index
    %c0_9 = arith.constant 0 : index
    %6 = vector.load %arg3[%c0_7, %c0_8, %c0_9] : memref<2x4x128xf32, #tpu.memory_space<vmem>>, vector<1x4x128xf32>
    %7 = vector.shape_cast %6 : vector<1x4x128xf32> to vector<4x128xf32>
    %8 = vector.extract_strided_slice %5 {offsets = [0, 2], sizes = [4, 126], strides = [1, 1]} : vector<4x128xf32> to vector<4x126xf32>
    %9 = vector.extract_strided_slice %7 {offsets = [0, 0], sizes = [4, 2], strides = [1, 1]} : vector<4x128xf32> to vector<4x2xf32>
    %10 = tpu.concatenate %8, %9 in 1 : vector<4x126xf32>, vector<4x2xf32> -> vector<4x128xf32>
    %cst = arith.constant dense<0.000000e+00> : vector<4x128xf32>
    %11 = tpu.matmul %1, %5, %cst {dimension_numbers = #tpu.dot_dimension_numbers<[1], [0], [0], [1], [0, 0, 1, 1], [], []>} : vector<4x4xf32>, vector<4x128xf32>, vector<4x128xf32> -> vector<4x128xf32>
    %cst_10 = arith.constant dense<0.000000e+00> : vector<4x128xf32>
    %12 = tpu.matmul %3, %10, %cst_10 {dimension_numbers = #tpu.dot_dimension_numbers<[1], [0], [0], [1], [0, 0, 1, 1], [], []>} : vector<4x4xf32>, vector<4x128xf32>, vector<4x128xf32> -> vector<4x128xf32>
    %13 = arith.addf %11, %12 : vector<4x128xf32>
    %c0_11 = arith.constant 0 : index
    %c0_12 = arith.constant 0 : index
    %c0_13 = arith.constant 0 : index
    %14 = vector.load %arg5[%c0_11, %c0_12, %c0_13] : memref<2x4x128xf32, #tpu.memory_space<vmem>>, vector<1x4x128xf32>
    %15 = vector.shape_cast %14 : vector<1x4x128xf32> to vector<4x128xf32>
    %16 = vector.shape_cast %13 : vector<4x128xf32> to vector<1x4x128xf32>
    tpu.vector_store %arg5[%c0_11, %c0_12, %c0_13], %16 {strides = array<i32>} : memref<2x4x128xf32, #tpu.memory_space<vmem>>, vector<1x4x128xf32>,
    %c1_14 = arith.constant 1 : index
    %c0_15 = arith.constant 0 : index
    %c0_16 = arith.constant 0 : index
    %17 = vector.load %arg2[%c1_14, %c0_15, %c0_16] : memref<2x4x128xf32, #tpu.memory_space<vmem>>, vector<1x4x128xf32>
    %18 = vector.shape_cast %17 : vector<1x4x128xf32> to vector<4x128xf32>
    %c1_17 = arith.constant 1 : index
    %c0_18 = arith.constant 0 : index
    %c0_19 = arith.constant 0 : index
    %19 = vector.load %arg3[%c1_17, %c0_18, %c0_19] : memref<2x4x128xf32, #tpu.memory_space<vmem>>, vector<1x4x128xf32>
    %20 = vector.shape_cast %19 : vector<1x4x128xf32> to vector<4x128xf32>
    %21 = vector.extract_strided_slice %18 {offsets = [0, 2], sizes = [4, 126], strides = [1, 1]} : vector<4x128xf32> to vector<4x126xf32>
    %22 = vector.extract_strided_slice %20 {offsets = [0, 0], sizes = [4, 2], strides = [1, 1]} : vector<4x128xf32> to vector<4x2xf32>
    %23 = tpu.concatenate %21, %22 in 1 : vector<4x126xf32>, vector<4x2xf32> -> vector<4x128xf32>
    %cst_20 = arith.constant dense<0.000000e+00> : vector<4x128xf32>
    %24 = tpu.matmul %1, %18, %cst_20 {dimension_numbers = #tpu.dot_dimension_numbers<[1], [0], [0], [1], [0, 0, 1, 1], [], []>} : vector<4x4xf32>, vector<4x128xf32>, vector<4x128xf32> -> vector<4x128xf32>
    %cst_21 = arith.constant dense<0.000000e+00> : vector<4x128xf32>
    %25 = tpu.matmul %3, %23, %cst_21 {dimension_numbers = #tpu.dot_dimension_numbers<[1], [0], [0], [1], [0, 0, 1, 1], [], []>} : vector<4x4xf32>, vector<4x128xf32>, vector<4x128xf32> -> vector<4x128xf32>
    %26 = arith.addf %24, %25 : vector<4x128xf32>
    %c1_22 = arith.constant 1 : index
    %c0_23 = arith.constant 0 : index
    %c0_24 = arith.constant 0 : index
    %27 = vector.load %arg5[%c1_22, %c0_23, %c0_24] : memref<2x4x128xf32, #tpu.memory_space<vmem>>, vector<1x4x128xf32>
    %28 = vector.shape_cast %27 : vector<1x4x128xf32> to vector<4x128xf32>
    %29 = vector.shape_cast %26 : vector<4x128xf32> to vector<1x4x128xf32>
    tpu.vector_store %arg5[%c1_22, %c0_23, %c0_24], %29 {strides = array<i32>} : memref<2x4x128xf32, #tpu.memory_space<vmem>>, vector<1x4x128xf32>,
    return
  }
  func.func @transform_0(%arg0: i32, %arg1: i32) -> (i32, i32, i32) {
    %c0_i32 = arith.constant 0 : i32
    %c0_i32_0 = arith.constant 0 : i32
    return %arg0, %c0_i32, %arg1 : i32, i32, i32
  }
  func.func @transform_1(%arg0: i32, %arg1: i32) -> (i32, i32, i32) {
    %c1_i32 = arith.constant 1 : i32
    %0 = arith.addi %arg1, %c1_i32 : i32
    %c1_i32_0 = arith.constant 1 : i32
    %1 = arith.muli %0, %c1_i32_0 : i32
    %c0_i32 = arith.constant 0 : i32
    %2 = arith.minsi %1, %c0_i32 : i32
    %c0_i32_1 = arith.constant 0 : i32
    %c0_i32_2 = arith.constant 0 : i32
    return %arg0, %c0_i32_1, %2 : i32, i32, i32
  }
  func.func @transform_2(%arg0: i32, %arg1: i32) -> (i32, i32, i32) {
    %c0_i32 = arith.constant 0 : i32
    %c0_i32_0 = arith.constant 0 : i32
    %c0_i32_1 = arith.constant 0 : i32
    %c0_i32_2 = arith.constant 0 : i32
    return %c0_i32, %c0_i32_0, %c0_i32_1 : i32, i32, i32
  }
  func.func @transform_3(%arg0: i32, %arg1: i32) -> (i32, i32, i32) {
    %c0_i32 = arith.constant 0 : i32
    %c0_i32_0 = arith.constant 0 : i32
    return %arg0, %c0_i32, %arg1 : i32, i32, i32
  }
}

</mosaic_0001>

<bundles_post_ra>
// kernel: tpu_custom_call.1
= control target key start
LH: loop header
LB: loop body
LE: loop exit
PB: predicated region body
PF: predicated region fallthrough
CT: control target
= control target key end

     0   :  { %8 = vsyncpa [#allocation3], 0  ;;  %s609_s0 = inlined_call_operand.hbm [shape: f32[2,4,16], index: 0, kind: input, shape index: {}]   ;;  %s610_s1 = inlined_call_operand.hbm [shape: f32[2,4,16], index: 1, kind: input, shape index: {}]   ;;  %s611_s2 = inlined_call_operand.hbm [shape: f32[2,4,4], index: 2, kind: input, shape index: {}]   ;;  %s612_s3 = inlined_call_operand.hbm [shape: f32[2,4,14], index: 3, kind: output, shape index: {}]  }
   0x1   :  { %9 = vsyncpa [#allocation6], 0 }
   0x2   :  { %10 = vsyncpa [#allocation4], 0  ;;  %s544_s12 = smov [#allocation5]   ;;  %s545_s14 = smov [#allocation2]  }
   0x3   :  { %s33_s13 = sshll.u32 %s544_s12, 4  ;;  %s16_s15 = sshll.u32 %s545_s14, 4  ;;  %s34_s13 = int_to_ptr.vmem [resolvable:$true] %s33_s13  ;;  %s17_s15 = int_to_ptr.vmem [resolvable:$true] %s16_s15 }
   0x4   :  { %s466_s16 = scalar_lea.vmem %s34_s13, 128  ;;  %p471_p1 = scmp.lt.s32.totalorder %s34_s13, %s34_s13 }
   0x5   :  { %p467_p0 = scmp.ne.s32.totalorder %s34_s13, %s466_s16  ;;  %p472_p2 = scmp.lt.s32.totalorder %s466_s16, %s466_s16 }
   0x7   :  { %p473_p3 = por %p472_p2, %p471_p1 }
   0x9   :  { %p474_p4 = pnand %p473_p3, %p467_p0 }
   0xb   :  { %477 = shalt.err (!%p474_p4)
}
   0xc   :  { %s546_s17 = smov 64   ;;  %s547_s18 = smov 4  }
   0xd   :  { %39 = dma.hbm_to_vmem [thread:$0]  %s610_s1, 128, %s34_s13, [#allocation6], %s546_s17, %s546_s17, %s547_s18  }
   0xe   :  { %s486_s21 = scalar_lea.vmem %s17_s15, 128  ;;  %p491_p6 = scmp.lt.s32.totalorder %s17_s15, %s17_s15 }
   0xf   :  { %p487_p5 = scmp.ne.s32.totalorder %s17_s15, %s486_s21  ;;  %p492_p7 = scmp.lt.s32.totalorder %s486_s21, %s486_s21 }
  0x11   :  { %p493_p8 = por %p492_p7, %p491_p6 }
  0x13   :  { %p494_p9 = pnand %p493_p8, %p487_p5 }
  0x15   :  { %497 = shalt.err (!%p494_p9)
}
  0x16   :  { %22 = dma.hbm_to_vmem [thread:$0]  %s609_s0, 128, %s17_s15, [#allocation3], %s546_s17, %s546_s17, %s547_s18  }
  0x17   :  { %s548_s24 = smov [#allocation7]  }
  0x18   :  { %s45_s25 = sshll.u32 %s548_s24, 4  ;;  %s46_s25 = int_to_ptr.vmem [resolvable:$true] %s45_s25 }
  0x19   :  { %s506_s26 = scalar_lea.vmem %s46_s25, 128  ;;  %p511_p11 = scmp.lt.s32.totalorder %s46_s25, %s46_s25 }
  0x1a   :  { %p507_p10 = scmp.ne.s32.totalorder %s46_s25, %s506_s26  ;;  %p512_p12 = scmp.lt.s32.totalorder %s506_s26, %s506_s26 }
  0x1c   :  { %p513_p13 = por %p512_p12, %p511_p11 }
  0x1e   :  { %p514_p0 = pnand %p513_p13, %p507_p10 }
  0x20   :  { %517 = shalt.err (!%p514_p0)
}
  0x21   :  { %51 = dma.hbm_to_vmem [thread:$0]  %s611_s2, 128, %s46_s25, [#allocation6], %s546_s17, %s546_s17, %s547_s18  }
  0x22   :  { %538 = dma.done.wait [#allocation3], 128  }
  0x23   :  { %539 = vsyncadd [#allocation3], 4294967168 }
  0x24   :  { %540 = dma.done.wait [#allocation6], 256  }
  0x25   :  { %541 = vsyncadd [#allocation6], 4294967040  ;;  %v549_v0 = vmov 0.0   ;;  %vm550_vm0 = vmmov 0   ;;  %vm83_vm1 = vcmask 1043456   ;;  %vm79_vm2 = vcmask 31744  }
  0x26   :  { %434 = vmatprep.subr.mxu1 %v549_v0  ;;  %429 = vmatprep.subr.mxu0 %v549_v0  ;;  %v234_v1 = vld [vmem:[#allocation2 + $0x4] sm:$0xf]  ;;  %v67_v2 = vld [vmem:[#allocation2] sm:$0xf]  ;;  %s551_s0 = smov 126   ;;  %vm77_vm3 = vcmask 1031168  }
  0x27   :  { %436 = vmatprep.mubr.msk.f32.mxu1 %vm550_vm0, %v549_v0  ;;  %431 = vmatprep.mubr.msk.f32.mxu0 %vm550_vm0, %v549_v0  ;;  %v64_v3 = vld [vmem:[#allocation7] sm:$0xf]  ;;  %v236_v4 = vld [vmem:[#allocation5 + $0x4] sm:$0xf]  ;;  %v68_v5 = vld [vmem:[#allocation5] sm:$0xf] }
  0x28   :  { %238 = vrot.lane.b32.xlu1 %v234_v1, %s551_s0  ;;  %70 = vrot.lane.b32.xlu0 %v67_v2, %s551_s0  ;;  %v66_v10 = vld [vmem:[#allocation7 + $0x4] sm:$0xf]  ;;  %s552_s2 = smov [#allocation8]  }
  0x29   :  { %435 = vmatpush3.msk.msra.mxu1 %vm83_vm1, %v67_v2  ;;  %s398_s28 = sshll.u32 %s552_s2, 4  ;;  %s399_s28 = int_to_ptr.vmem [resolvable:$true] %s398_s28 }
  0x2a   :  { %437 = vmatmul.mubr.msk.f32.vlgmr.msra.gmra.mxu1 %vm79_vm2, %v64_v3  ;;  %444 = vmatprep.subr.mxu1 %v549_v0  ;;  %s518_s29 = scalar_lea.vmem %s399_s28, 128  ;;  %p523_p2 = scmp.lt.s32.totalorder %s399_s28, %s399_s28 }
  0x2b   :  { %445 = vmatpush3.msk.msra.mxu1 %vm83_vm1, %v234_v1  ;;  %446 = vmatprep.mubr.msk.f32.mxu1 %vm550_vm0, %v549_v0  ;;  %p519_p1 = scmp.ne.s32.totalorder %s399_s28, %s518_s29  ;;  %p524_p3 = scmp.lt.s32.totalorder %s518_s29, %s518_s29 }
  0x2c   :  { %242 = vrot.lane.b32.xlu1 %v236_v4, %s551_s0  ;;  %74 = vrot.lane.b32.xlu0 %v68_v5, %s551_s0 }
  0x2d   :  { %p525_p4 = por %p524_p3, %p523_p2 }
  0x2e   :  { %447 = vmatmul.mubr.msk.f32.vlgmr.msra.gmra.mxu1 %vm79_vm2, %v64_v3 }
  0x2f   :  { %p526_p5 = pnand %p525_p4, %p519_p1 }
  0x9a   :  { %v239_v6 = vpop.permute.xlu1 %238  ;;  %v71_v7 = vpop.permute.xlu0 %70 }
  0x9e   :  { %v243_v8 = vpop.permute.xlu1 %242  ;;  %v75_v9 = vpop.permute.xlu0 %74 }
  0x9f   :  { %v78_v11 = vsel %vm77_vm3, %v71_v7, %v75_v9  ;;  %v245_v12 = vsel %vm77_vm3, %v239_v6, %v243_v8 }
  0xa0   :  { %430 = vmatpush3.msk.msra.mxu0 %vm83_vm1, %v78_v11 }
  0xa1   :  { %432 = vmatmul.mubr.msk.f32.vlgmr.msra.gmra.mxu0 %vm79_vm2, %v66_v10  ;;  %439 = vmatprep.subr.mxu0 %v549_v0 }
  0xa2   :  { %440 = vmatpush3.msk.msra.mxu0 %vm83_vm1, %v245_v12  ;;  %441 = vmatprep.mubr.msk.f32.mxu0 %vm550_vm0, %v549_v0 }
  0xa5   :  { %442 = vmatmul.mubr.msk.f32.vlgmr.msra.gmra.mxu0 %vm79_vm2, %v66_v10 }
  0xea   :  { %v228_v13 = vpop.f32.mrf.mxu1 }
  0xec   :  { %v438_v14 = vpop.f32.mrf.mxu1 }
  0xee   :  { %v387_v15 = vpop.f32.mrf.mxu1 }
  0xf0   :  { %v448_v16 = vpop.f32.mrf.mxu1 }
 0x161   :  { %v153_v17 = vpop.f32.mrf.mxu0 }
 0x162   :  { %v229_v18 = vadd.f32 %v228_v13, %v153_v17 }
 0x163   :  { %v433_v19 = vpop.f32.mrf.mxu0 }
 0x164   :  { %232 = vst [vmem:[#allocation8] sm:$0xf] %v229_v18 }
 0x165   :  { %v315_v20 = vpop.f32.mrf.mxu0 }
 0x166   :  { %v388_v21 = vadd.f32 %v387_v15, %v315_v20 }
 0x167   :  { %v443_v22 = vpop.f32.mrf.mxu0 }
 0x168   :  { %392 = vst [vmem:[#allocation8 + $0x4] sm:$0xf] %v388_v21 }
 0x169   :  { %529 = shalt.err (!%p526_p5)
}
 0x16a   :  { %404 = dma.vmem_to_hbm [thread:$0]  %s399_s28, 128, %s612_s3, [#allocation4], %s546_s17, %s546_s17, %s547_s18  }
 0x16b   :  { %542 = dma.done.wait [#allocation4], 128  }
 0x16c   :  { %543 = vsyncadd [#allocation4], 4294967168 }
 0x16d   :  { %408 = vsyncpa [#allocation3], 1 }
 0x16e   :  { %409 = vsyncpa [#allocation6], 1 }
 0x16f   :  { %410 = vsyncpa [#allocation4], 1 }

</bundles_post_ra>
